<compile_context>
chip_gen: v7x
topology: tpu7x:2x2x1
jax: 0.10.0
libtpu: 0.0.40
codegen_flags: <defaults>
</compile_context>

<pallas_src>
import functools

import jax
import jax.numpy as jnp
from jax.experimental import pallas as pl
from jax.experimental.pallas import tpu as pltpu

N_IN, H1, H2, N_OUT = 784, 128, 64, 10
H2_PAD = 128           # lane-full hidden width for fc2 out / fc3 in
N_OUT_PAD = 128        # lane-full logit width inside the kernel
NEG_BIG = -1e30        # finite "-inf" for padded logit columns
_VMEM_LIMIT_BYTES = 32 * 1024 * 1024   # fits tb<=2048 f32 stream on v5e/v6e/v7x


def _mlp_kernel(x_ref, w1_ref, b1_ref, w2_ref, b2_ref, w3_ref, b3_ref, o_ref):
    # fc1 + ReLU: x streamed as f32, cast to bf16 here (VPU, hidden under DMA);
    # bf16 operands on the MXU, f32 accumulation.
    x = x_ref[...].astype(jnp.bfloat16)
    h1 = jnp.dot(x, w1_ref[...], preferred_element_type=jnp.float32)
    h1 = jnp.maximum(h1 + b1_ref[...], 0.0)
    # fc2 + ReLU: f32 operands (tiny FLOPs, fully hidden -> free accuracy).
    # Padded hidden columns have zero weight/bias -> stay exactly 0 after ReLU.
    h2 = jnp.dot(h1, w2_ref[...], preferred_element_type=jnp.float32)
    h2 = jnp.maximum(h2 + b2_ref[...], 0.0)
    # fc3: logits padded to 128 lanes; padded bias columns are -1e30 so they
    # contribute exp(.)=0 to the softmax denominator.
    logits = jnp.dot(h2, w3_ref[...], preferred_element_type=jnp.float32)
    logits = logits + b3_ref[...]
    # log_softmax over features (exact over the 10 real columns).
    m = jnp.max(logits, axis=-1, keepdims=True)
    shifted = logits - m
    lse = jnp.log(jnp.sum(jnp.exp(shifted), axis=-1, keepdims=True))
    o_ref[...] = (shifted[:, :N_OUT] - lse).astype(o_ref.dtype)


def _round_up(n, m):
    return ((n + m - 1) // m) * m


def _pick_tile(B, block_b):
    """Pick (tb, bp): batch tile (multiple of 8, f32 sublane) and padded batch."""
    block_b = max(8, min((block_b // 8) * 8, 2048))
    cap = min(block_b, _round_up(B, 8))
    # Keep >=2 grid steps for large batches so v7x dual-TC sharding has work.
    if B > 256:
        cap = min(cap, _round_up(-(-B // 2), 8))
    cap = max(cap, 8)
    # Prefer a tile that divides B exactly -> no jnp.pad copy of x in HBM.
    tb = cap
    while tb >= 8:
        if B % tb == 0:
            return tb, B
        tb -= 8
    return cap, _round_up(B, cap)


def _prepare_params(params):
    """Kernel-ready params: bf16 fc1, f32 fc2/fc3, zero-padded hidden width,
    lane-padded logits with -1e30 bias in the padded columns."""
    w1 = params["w1"].astype(jnp.bfloat16)                                   # (784, 128)
    b1 = params["b1"].reshape(1, H1).astype(jnp.float32)                     # (1, 128)
    w2 = jnp.zeros((H1, H2_PAD), jnp.float32).at[:, :H2].set(
        params["w2"].astype(jnp.float32))                                    # (128, 128)
    b2 = jnp.zeros((1, H2_PAD), jnp.float32).at[0, :H2].set(
        params["b2"].reshape(-1).astype(jnp.float32))                        # (1, 128)
    w3 = jnp.zeros((H2_PAD, N_OUT_PAD), jnp.float32).at[:H2, :N_OUT].set(
        params["w3"].astype(jnp.float32))                                    # (128, 128)
    b3 = jnp.full((1, N_OUT_PAD), NEG_BIG, jnp.float32).at[0, :N_OUT].set(
        params["b3"].reshape(-1).astype(jnp.float32))                        # (1, 128)
    return w1, b1, w2, b2, w3, b3


@functools.partial(jax.jit, static_argnames=("block_b",))
def network_forward(x, params, *, block_b=1024):
    """Forward pass. x: (B, 784). params: w1(784,128), b1(128), w2(128,64),
    b2(64), w3(64,10), b3(10) — weights stored (in, out)."""
    B = x.shape[0]
    w1, b1, w2, b2, w3, b3 = _prepare_params(params)
    x = x.astype(jnp.float32)   # streamed f32; bf16 cast happens in-kernel

    tb, bp = _pick_tile(B, block_b)
    if bp != B:
        # TODO(synk): in-kernel masking of the last partial tile would avoid this pad copy.
        x = jnp.pad(x, ((0, bp - B), (0, 0)))

    grid = (bp // tb,)
    resident = lambda shape: pl.BlockSpec(shape, lambda i: (0, 0))

    flops = 2 * bp * (N_IN * H1 + H1 * H2_PAD + H2_PAD * N_OUT_PAD)
    bytes_accessed = (bp * N_IN * 4
                      + sum(a.size * a.dtype.itemsize
                            for a in (w1, b1, w2, b2, w3, b3))
                      + bp * N_OUT * 4)

    out = pl.pallas_call(
        _mlp_kernel,
        out_shape=jax.ShapeDtypeStruct((bp, N_OUT), jnp.float32),
        grid=grid,
        in_specs=[
            pl.BlockSpec((tb, N_IN), lambda i: (i, 0)),    # streamed f32 batch tile
            resident(w1.shape), resident(b1.shape),        # VMEM-resident weights
            resident(w2.shape), resident(b2.shape),
            resident(w3.shape), resident(b3.shape),
        ],
        out_specs=pl.BlockSpec((tb, N_OUT), lambda i: (i, 0)),
        compiler_params=pltpu.CompilerParams(
            dimension_semantics=("parallel",),
            vmem_limit_bytes=_VMEM_LIMIT_BYTES),
        cost_estimate=pl.CostEstimate(
            flops=flops,
            transcendentals=bp * (N_OUT_PAD + 1),
            bytes_accessed=bytes_accessed),
    )(x, w1, b1, w2, b2, w3, b3)

    return out if bp == B else out[:B]


def init_params(key):
    """Deterministic PyTorch-default-like init: uniform(-1/sqrt(fan_in), 1/sqrt(fan_in)),
    weights stored (in, out). Note: Network.initParams() (fc1 ~ N(0,1), fc1.bias=0) is a
    training-time re-init, not part of the forward semantics."""
    ks = jax.random.split(key, 6)

    def u(k, shape, fan_in):
        bound = 1.0 / float(fan_in) ** 0.5
        return jax.random.uniform(k, shape, jnp.float32, -bound, bound)

    return {
        "w1": u(ks[0], (N_IN, H1), N_IN), "b1": u(ks[1], (H1,), N_IN),
        "w2": u(ks[2], (H1, H2), H1),     "b2": u(ks[3], (H2,), H1),
        "w3": u(ks[4], (H2, N_OUT), H2),  "b3": u(ks[5], (N_OUT,), H2),
    }


def _reference(x, p):
    h1 = jnp.maximum(x @ p["w1"] + p["b1"], 0.0)
    h2 = jnp.maximum(h1 @ p["w2"] + p["b2"], 0.0)
    logits = h2 @ p["w3"] + p["b3"]
    return jax.nn.log_softmax(logits, axis=1)


if __name__ == "__main__":
    key = jax.random.PRNGKey(0)
    kx, kp = jax.random.split(key)
    B = 37  # odd batch: exercises batch padding + a 3-step grid
    x = jax.random.normal(kx, (B, N_IN), jnp.float32)
    params = init_params(kp)

    out = network_forward(x, params, block_b=16)   # small tile -> multi-step grid
    out = jax.block_until_ready(out)

    ref = _reference(x, params)
    assert out.shape == (B, N_OUT)
    assert bool(jnp.all(jnp.isfinite(out)))
    # Only fc1 runs in bf16 (x/w1); fc2/fc3 stay f32 -> tolerance vs f32 reference.
    assert jnp.allclose(out, ref, atol=3e-2, rtol=3e-2), "mismatch vs reference"

    # Also exercise the default (large-tile, divisor-picking) path once.
    out2 = jax.block_until_ready(network_forward(x, params))
    assert jnp.allclose(out2, ref, atol=3e-2, rtol=3e-2), "mismatch (default tile)"

    print("KERNEL_OK")
</pallas_src>

<mosaic_0001>
module attributes {stable_mosaic.version = 11 : i64} {
  func.func @_mlp_kernel(%arg0: i32, %arg1: memref<16x784xf32, #tpu.memory_space<vmem>>, %arg2: memref<784x128xbf16, #tpu.memory_space<vmem>>, %arg3: memref<1x128xf32, #tpu.memory_space<vmem>>, %arg4: memref<128x128xf32, #tpu.memory_space<vmem>>, %arg5: memref<1x128xf32, #tpu.memory_space<vmem>>, %arg6: memref<128x128xf32, #tpu.memory_space<vmem>>, %arg7: memref<1x128xf32, #tpu.memory_space<vmem>>, %arg8: memref<16x10xf32, #tpu.memory_space<vmem>>) attributes {dimension_semantics = [#tpu.dimension_semantics<parallel>], iteration_bounds = array<i64: 3>, scalar_prefetch = 0 : i64, scratch_operands = 0 : i64, tpu.core_type = #tpu.core_type<tc>, window_params = [{transform_indices = @transform_0, window_bounds = array<i64: 16, 784>}, {pipeline_mode = #tpu.pipeline_mode<synchronous>, transform_indices = @transform_1, window_bounds = array<i64: 784, 128>}, {pipeline_mode = #tpu.pipeline_mode<synchronous>, transform_indices = @transform_2, window_bounds = array<i64: 1, 128>}, {pipeline_mode = #tpu.pipeline_mode<synchronous>, transform_indices = @transform_3, window_bounds = array<i64: 128, 128>}, {pipeline_mode = #tpu.pipeline_mode<synchronous>, transform_indices = @transform_4, window_bounds = array<i64: 1, 128>}, {pipeline_mode = #tpu.pipeline_mode<synchronous>, transform_indices = @transform_5, window_bounds = array<i64: 128, 128>}, {pipeline_mode = #tpu.pipeline_mode<synchronous>, transform_indices = @transform_6, window_bounds = array<i64: 1, 128>}, {transform_indices = @transform_7, window_bounds = array<i64: 16, 10>}]} {
    %c0 = arith.constant 0 : index
    %c0_0 = arith.constant 0 : index
    %0 = vector.load %arg1[%c0, %c0_0] : memref<16x784xf32, #tpu.memory_space<vmem>>, vector<16x784xf32>
    %1 = arith.truncf %0 : vector<16x784xf32> to vector<16x784xbf16>
    %c0_1 = arith.constant 0 : index
    %c0_2 = arith.constant 0 : index
    %2 = vector.load %arg2[%c0_1, %c0_2] : memref<784x128xbf16, #tpu.memory_space<vmem>>, vector<784x128xbf16>
    %cst = arith.constant dense<0.000000e+00> : vector<16x128xf32>
    %3 = tpu.matmul %1, %2, %cst {dimension_numbers = #tpu.dot_dimension_numbers<[1], [0], [0], [1], [0, 0, 1, 1], [], []>} : vector<16x784xbf16>, vector<784x128xbf16>, vector<16x128xf32> -> vector<16x128xf32>
    %c0_3 = arith.constant 0 : index
    %c0_4 = arith.constant 0 : index
    %4 = vector.load %arg3[%c0_3, %c0_4] : memref<1x128xf32, #tpu.memory_space<vmem>>, vector<1x128xf32>
    %5 = vector.broadcast %4 : vector<1x128xf32> to vector<16x128xf32>
    %6 = arith.addf %3, %5 : vector<16x128xf32>
    %cst_5 = arith.constant 0.000000e+00 : f32
    %7 = vector.broadcast %cst_5 : f32 to vector<16x128xf32>
    %8 = arith.maximumf %6, %7 : vector<16x128xf32>
    %c0_6 = arith.constant 0 : index
    %c0_7 = arith.constant 0 : index
    %9 = vector.load %arg4[%c0_6, %c0_7] : memref<128x128xf32, #tpu.memory_space<vmem>>, vector<128x128xf32>
    %cst_8 = arith.constant dense<0.000000e+00> : vector<16x128xf32>
    %10 = tpu.matmul %8, %9, %cst_8 {dimension_numbers = #tpu.dot_dimension_numbers<[1], [0], [0], [1], [0, 0, 1, 1], [], []>} : vector<16x128xf32>, vector<128x128xf32>, vector<16x128xf32> -> vector<16x128xf32>
    %c0_9 = arith.constant 0 : index
    %c0_10 = arith.constant 0 : index
    %11 = vector.load %arg5[%c0_9, %c0_10] : memref<1x128xf32, #tpu.memory_space<vmem>>, vector<1x128xf32>
    %12 = vector.broadcast %11 : vector<1x128xf32> to vector<16x128xf32>
    %13 = arith.addf %10, %12 : vector<16x128xf32>
    %cst_11 = arith.constant 0.000000e+00 : f32
    %14 = vector.broadcast %cst_11 : f32 to vector<16x128xf32>
    %15 = arith.maximumf %13, %14 : vector<16x128xf32>
    %c0_12 = arith.constant 0 : index
    %c0_13 = arith.constant 0 : index
    %16 = vector.load %arg6[%c0_12, %c0_13] : memref<128x128xf32, #tpu.memory_space<vmem>>, vector<128x128xf32>
    %cst_14 = arith.constant dense<0.000000e+00> : vector<16x128xf32>
    %17 = tpu.matmul %15, %16, %cst_14 {dimension_numbers = #tpu.dot_dimension_numbers<[1], [0], [0], [1], [0, 0, 1, 1], [], []>} : vector<16x128xf32>, vector<128x128xf32>, vector<16x128xf32> -> vector<16x128xf32>
    %c0_15 = arith.constant 0 : index
    %c0_16 = arith.constant 0 : index
    %18 = vector.load %arg7[%c0_15, %c0_16] : memref<1x128xf32, #tpu.memory_space<vmem>>, vector<1x128xf32>
    %19 = vector.broadcast %18 : vector<1x128xf32> to vector<16x128xf32>
    %20 = arith.addf %17, %19 : vector<16x128xf32>
    %cst_17 = arith.constant dense<0xFF800000> : vector<16xf32>
    %21 = vector.multi_reduction <maximumf>, %20, %cst_17 [1] : vector<16x128xf32> to vector<16xf32>
    %22 = vector.shape_cast %21 : vector<16xf32> to vector<16x1xf32>
    %23 = vector.broadcast %22 : vector<16x1xf32> to vector<16x128xf32>
    %24 = arith.subf %20, %23 : vector<16x128xf32>
    %25 = math.exp %24 : vector<16x128xf32>
    %cst_18 = arith.constant dense<0.000000e+00> : vector<16xf32>
    %26 = vector.multi_reduction <add>, %25, %cst_18 [1] : vector<16x128xf32> to vector<16xf32>
    %27 = vector.shape_cast %26 : vector<16xf32> to vector<16x1xf32>
    %28 = math.log %27 : vector<16x1xf32>
    %29 = vector.extract_strided_slice %24 {offsets = [0, 0], sizes = [16, 10], strides = [1, 1]} : vector<16x128xf32> to vector<16x10xf32>
    %30 = vector.broadcast %28 : vector<16x1xf32> to vector<16x10xf32>
    %31 = arith.subf %29, %30 : vector<16x10xf32>
    %c0_19 = arith.constant 0 : index
    %c0_20 = arith.constant 0 : index
    %32 = vector.load %arg8[%c0_19, %c0_20] : memref<16x10xf32, #tpu.memory_space<vmem>>, vector<16x10xf32>
    tpu.vector_store %arg8[%c0_19, %c0_20], %31 {strides = array<i32>} : memref<16x10xf32, #tpu.memory_space<vmem>>, vector<16x10xf32>,
    return
  }
  func.func @transform_0(%arg0: i32) -> (i32, i32) {
    %c0_i32 = arith.constant 0 : i32
    %c0_i32_0 = arith.constant 0 : i32
    return %arg0, %c0_i32 : i32, i32
  }
  func.func @transform_1(%arg0: i32) -> (i32, i32) {
    %c0_i32 = arith.constant 0 : i32
    %c0_i32_0 = arith.constant 0 : i32
    %c0_i32_1 = arith.constant 0 : i32
    return %c0_i32, %c0_i32_0 : i32, i32
  }
  func.func @transform_2(%arg0: i32) -> (i32, i32) {
    %c0_i32 = arith.constant 0 : i32
    %c0_i32_0 = arith.constant 0 : i32
    %c0_i32_1 = arith.constant 0 : i32
    return %c0_i32, %c0_i32_0 : i32, i32
  }
  func.func @transform_3(%arg0: i32) -> (i32, i32) {
    %c0_i32 = arith.constant 0 : i32
    %c0_i32_0 = arith.constant 0 : i32
    %c0_i32_1 = arith.constant 0 : i32
    return %c0_i32, %c0_i32_0 : i32, i32
  }
  func.func @transform_4(%arg0: i32) -> (i32, i32) {
    %c0_i32 = arith.constant 0 : i32
    %c0_i32_0 = arith.constant 0 : i32
    %c0_i32_1 = arith.constant 0 : i32
    return %c0_i32, %c0_i32_0 : i32, i32
  }
  func.func @transform_5(%arg0: i32) -> (i32, i32) {
    %c0_i32 = arith.constant 0 : i32
    %c0_i32_0 = arith.constant 0 : i32
    %c0_i32_1 = arith.constant 0 : i32
    return %c0_i32, %c0_i32_0 : i32, i32
  }
  func.func @transform_6(%arg0: i32) -> (i32, i32) {
    %c0_i32 = arith.constant 0 : i32
    %c0_i32_0 = arith.constant 0 : i32
    %c0_i32_1 = arith.constant 0 : i32
    return %c0_i32, %c0_i32_0 : i32, i32
  }
  func.func @transform_7(%arg0: i32) -> (i32, i32) {
    %c0_i32 = arith.constant 0 : i32
    %c0_i32_0 = arith.constant 0 : i32
    return %arg0, %c0_i32 : i32, i32
  }
}

</mosaic_0001>

<bundles_post_ra>
// kernel: network_forward.1
= control target key start
LH: loop header
LB: loop body
LE: loop exit
PB: predicated region body
PF: predicated region fallthrough
CT: control target
= control target key end

     0   :  { %s1579_s24 = smov 0   ;;  %s1870_s0 = inlined_call_operand.vmem [shape: f32[48,784], index: 0, kind: input, shape index: {}]   ;;  %s1871_s1 = inlined_call_operand.vmem [shape: bf16[784,128], index: 1, kind: input, shape index: {}]   ;;  %s1872_s2 = inlined_call_operand.vmem [shape: f32[1,128], index: 2, kind: input, shape index: {}]   ;;  %s1873_s3 = inlined_call_operand.vmem [shape: f32[128,128], index: 3, kind: input, shape index: {}]   ;;  %s1874_s4 = inlined_call_operand.vmem [shape: f32[1,128], index: 4, kind: input, shape index: {}]   ;;  %s1875_s5 = inlined_call_operand.vmem [shape: f32[128,128], index: 5, kind: input, shape index: {}]   ;;  %s1876_s6 = inlined_call_operand.vmem [shape: f32[1,128], index: 6, kind: input, shape index: {}]   ;;  %s1877_s7 = inlined_call_operand.vmem [shape: f32[48,10], index: 7, kind: output, shape index: {}]  }
   0x1 LB: > { %s1153_s25 = sadd.s32 4294967295, %s1535_s24   ;;  %p1157_p0 = scmp.ge.s32.totalorder %s1535_s24, 1  ;;  %s1535_s24 = sphi %s1579_s24, %s17_s24  }
   0x2   : > { %p239_p1 = scmp.lt.s32.totalorder %s1535_s24, 4 }
   0x4   : > { %p240_p2 = pnand %p1157_p0, %p239_p1 }
   0x5   : > { %v1472_v0 = vld [vmem:[%s1871_s1 + $0x40] sm:$0xff] (!%p240_p2)   ;;  %v1476_v4 = vld [vmem:[%s1871_s1 + $0x48] sm:$0xff] (!%p240_p2)   ;;  %v1480_v8 = vld [vmem:[%s1871_s1 + $0x50] sm:$0xff] (!%p240_p2)   ;;  %s1158_s10 = sshll.u32 (!%p240_p2), %s1153_s25, 1  ;;  %v1537_v43 = vmov (!%p240_p2), 0.0   ;;  %vm1538_vm0 = vmmov (!%p240_p2), 0  }
   0x6   : > { %243 = sbr.rel (%p240_p2) target bundleno = 1045 (0x415), region = 48  ;;  %v1473_v1 = vld [vmem:[%s1871_s1] sm:$0xff] (!%p240_p2)   ;;  %1217 = vmatprep.subr.bf16.mxu0 (!%p240_p2), %v1472_v0  ;;  %v1477_v5 = vld [vmem:[%s1871_s1 + $0x8] sm:$0xff] (!%p240_p2)   ;;  %v1481_v9 = vld [vmem:[%s1871_s1 + $0x10] sm:$0xff] (!%p240_p2)   ;;  %p273_p3 = scmp.lt.s32.totalorder (!%p240_p2), %s1158_s10, 5  ;;  %vm706_vm1 = vcmask (!%p240_p2), 130048  }
   0x7   : > { %v1474_v2 = vld [vmem:[%s1871_s1 + $0xc0] sm:$0xff] (!%p240_p2)   ;;  %1218 = vmatpush3.bf16.msra.mxu0 (!%p240_p2), %v1473_v1  ;;  %v1478_v6 = vld [vmem:[%s1871_s1 + $0xc8] sm:$0xff] (!%p240_p2)   ;;  %v1482_v10 = vld [vmem:[%s1871_s1 + $0xd0] sm:$0xff] (!%p240_p2)   ;;  %vm1094_vm2 = vcmask (!%p240_p2), 80896  }
   0x8   : > { %v1475_v3 = vld [vmem:[%s1871_s1 + $0x80] sm:$0xff] (!%p240_p2)   ;;  %1239 = vmatprep.subr.bf16.mxu1 (!%p240_p2), %v1474_v2  ;;  %1219 = vmatprep.subr.bf16.mxu0 (!%p240_p2), %v1476_v4  ;;  %v1479_v7 = vld [vmem:[%s1871_s1 + $0x88] sm:$0xff] (!%p240_p2)   ;;  %v1483_v11 = vld [vmem:[%s1871_s1 + $0x90] sm:$0xff] (!%p240_p2)  }
   0x9   : > { %1240 = vmatpush3.bf16.msra.mxu1 (!%p240_p2), %v1475_v3  ;;  %v1484_v12 = vld [vmem:[%s1871_s1 + $0x58] sm:$0xff] (!%p240_p2)   ;;  %v1488_v16 = vld [vmem:[%s1871_s1 + $0x60] sm:$0xff] (!%p240_p2)   ;;  %v1492_v20 = vld [vmem:[%s1871_s1 + $0x68] sm:$0xff] (!%p240_p2)  }
   0xa   : > { %1241 = vmatprep.subr.bf16.mxu1 (!%p240_p2), %v1478_v6  ;;  %v1485_v13 = vld [vmem:[%s1871_s1 + $0x18] sm:$0xff] (!%p240_p2)   ;;  %v1489_v17 = vld [vmem:[%s1871_s1 + $0x20] sm:$0xff] (!%p240_p2)   ;;  %v1493_v21 = vld [vmem:[%s1871_s1 + $0x28] sm:$0xff] (!%p240_p2)  }
   0xb   : > { %1220 = vmatpush3.bf16.msra.mxu0 (!%p240_p2), %v1477_v5  ;;  %v1486_v14 = vld [vmem:[%s1871_s1 + $0xd8] sm:$0xff] (!%p240_p2)   ;;  %v1490_v18 = vld [vmem:[%s1871_s1 + $0xe0] sm:$0xff] (!%p240_p2)   ;;  %v1494_v22 = vld [vmem:[%s1871_s1 + $0xe8] sm:$0xff] (!%p240_p2)  }
   0xc   : > { %1221 = vmatprep.subr.bf16.mxu0 (!%p240_p2), %v1480_v8  ;;  %v1487_v15 = vld [vmem:[%s1871_s1 + $0x98] sm:$0xff] (!%p240_p2)   ;;  %v1491_v19 = vld [vmem:[%s1871_s1 + $0xa0] sm:$0xff] (!%p240_p2)   ;;  %v1495_v23 = vld [vmem:[%s1871_s1 + $0xa8] sm:$0xff] (!%p240_p2)  }
   0xd   : > { %1242 = vmatpush3.bf16.msra.mxu1 %v1479_v7  ;;  %s1879_s10 = smov (!%p273_p3, %s1158_s10), 5  ;;  %v1496_v24 = vld [vmem:[%s1871_s1 + $0x70] sm:$0xff]   ;;  %v1500_v28 = vld [vmem:[%s1871_s1 + $0x78] sm:$0xff]   ;;  %v1504_v38 = vld [vmem:[%s1871_s1 + $0x140] sm:$0xff]  }
   0xe   : > { %1243 = vmatprep.subr.bf16.mxu1 %v1482_v10  ;;  %s1461_s12 = smul.u32 56, %s1879_s10  ;;  %v1497_v25 = vld [vmem:[%s1871_s1 + $0x30] sm:$0xff]   ;;  %v1501_v29 = vld [vmem:[%s1871_s1 + $0x38] sm:$0xff]   ;;  %v1505_v42 = vld [vmem:[%s1871_s1 + $0x100] sm:$0xff]   ;;  %s1161_s9 = sshll.u32 %s1879_s10, 3 }
   0xf   : > { %1222 = vmatpush3.bf16.msra.mxu0 %v1481_v9  ;;  %v1498_v26 = vld [vmem:[%s1871_s1 + $0xf0] sm:$0xff]   ;;  %v1502_v30 = vld [vmem:[%s1871_s1 + $0xf8] sm:$0xff]   ;;  %v1506_v47 = vld [vmem:[%s1871_s1 + $0x148] sm:$0xff]  }
  0x10   : > { %1223 = vmatprep.subr.bf16.mxu0 %v1484_v12  ;;  %v1499_v27 = vld [vmem:[%s1871_s1 + $0xb0] sm:$0xff]   ;;  %s1682_s22 = scalar_lea.vmem %s1870_s0, %s1461_s12  ;;  %v1503_v34 = vld [vmem:[%s1871_s1 + $0xb8] sm:$0xff]   ;;  %v1507_v48 = vld [vmem:[%s1871_s1 + $0x108] sm:$0xff]   ;;  %s283_s12 = scalar_lea.vmem %s1877_s7, %s1161_s9 }
  0x11   : > { %1244 = vmatpush3.bf16.msra.mxu1 %v1483_v11  ;;  %v287_v31 = vld [vmem:[%s1682_s22 + $0x8] sm:$0xff]  ;;  %v294_v32 = vld [vmem:[%s1682_s22 + $0x40] sm:$0xff]  ;;  %v293_v36 = vld [vmem:[%s1682_s22 + $0x38] sm:$0xff] }
  0x12   : > { %1245 = vmatprep.subr.bf16.mxu1 %v1486_v14  ;;  %v301_v33 = vpack.c.bf16 %v294_v32, %v287_v31  ;;  %v286_v35 = vld [vmem:[%s1682_s22] sm:$0xff]  ;;  %v289_v39 = vld [vmem:[%s1682_s22 + $0x18] sm:$0xff]  ;;  %v296_v40 = vld [vmem:[%s1682_s22 + $0x50] sm:$0xff] }
  0x13   : > { %1224 = vmatpush3.bf16.msra.mxu0 %v1485_v13  ;;  %v300_v37 = vpack.c.bf16 %v293_v36, %v286_v35  ;;  %v303_v41 = vpack.c.bf16 %v296_v40, %v289_v39  ;;  %v288_v44 = vld [vmem:[%s1682_s22 + $0x10] sm:$0xff]  ;;  %v295_v45 = vld [vmem:[%s1682_s22 + $0x48] sm:$0xff]  ;;  %v1510_v51 = vld [vmem:[%s1871_s1 + $0x158] sm:$0xff]  }
  0x14   : > { %1225 = vmatprep.subr.bf16.mxu0 %v1488_v16  ;;  %742 = vmatprep.mubr.bf16.mxu0 %v301_v33  ;;  %v302_v46 = vpack.c.bf16 %v295_v45, %v288_v44  ;;  %v1508_v49 = vld [vmem:[%s1871_s1 + $0x150] sm:$0xff]   ;;  %v1511_v52 = vld [vmem:[%s1871_s1 + $0x118] sm:$0xff]   ;;  %v1512_v53 = vld [vmem:[%s1871_s1 + $0x160] sm:$0xff]  }
  0x15   : > { %1246 = vmatpush3.bf16.msra.mxu1 %v1487_v15  ;;  %783 = vmatprep.mubr.bf16.mxu1 %v303_v41  ;;  %v1509_v50 = vld [vmem:[%s1871_s1 + $0x110] sm:$0xff]   ;;  %v1513_v54 = vld [vmem:[%s1871_s1 + $0x120] sm:$0xff]   ;;  %v1514_v55 = vld [vmem:[%s1871_s1 + $0x168] sm:$0xff]  }
  0x16   : > { %1247 = vmatprep.subr.bf16.mxu1 %v1490_v18  ;;  %v1520_v56 = vld [vmem:[%s1871_s1 + $0x180] sm:$0xff]   ;;  %v291_v57 = vld [vmem:[%s1682_s22 + $0x28] sm:$0xff]  ;;  %v292_v61 = vld [vmem:[%s1682_s22 + $0x30] sm:$0xff] }
  0x17   : > { %1226 = vmatpush3.bf16.msra.mxu0 %v1489_v17  ;;  %v298_v58 = vld [vmem:[%s1682_s22 + $0x60] sm:$0xff]  ;;  %v1515_v59 = vld [vmem:[%s1871_s1 + $0x128] sm:$0xff]   ;;  %v1516_v63 = vld [vmem:[%s1871_s1 + $0x170] sm:$0xff]  }
  0x18   : > { %1227 = vmatprep.subr.bf16.mxu0 %v1492_v20  ;;  %v305_v60 = vpack.c.bf16 %v298_v58, %v291_v57  ;;  %v299_v62 = vld [vmem:[%s1682_s22 + $0x68] sm:$0xff]  ;;  %v1517_v1 = vld [vmem:[%s1871_s1 + $0x130] sm:$0xff]   ;;  %v1518_v2 = vld [vmem:[%s1871_s1 + $0x178] sm:$0xff]  }
  0x19   : > { %1248 = vmatpush3.bf16.msra.mxu1 %v1491_v19  ;;  %v306_v0 = vpack.c.bf16 %v299_v62, %v292_v61  ;;  %v1519_v3 = vld [vmem:[%s1871_s1 + $0x138] sm:$0xff]   ;;  %v290_v4 = vld [vmem:[%s1682_s22 + $0x20] sm:$0xff]  ;;  %v877_v8 = vld [vmem:[%s1873_s3 + $0x8] sm:$0xff] }
  0x1a   : > { %1249 = vmatprep.subr.bf16.mxu1 %v1494_v22  ;;  %v297_v5 = vld [vmem:[%s1682_s22 + $0x58] sm:$0xff]  ;;  %v876_v7 = vld [vmem:[%s1873_s3] sm:$0xff]  ;;  %v878_v9 = vld [vmem:[%s1873_s3 + $0x10] sm:$0xff] }
  0x1b   : > { %1228 = vmatpush3.bf16.msra.mxu0 %v1493_v21  ;;  %v304_v6 = vpack.c.bf16 %v297_v5, %v290_v4  ;;  %v1397_v10 = vpack.c.bf16 %v877_v8, %v876_v7  ;;  %v879_v11 = vld [vmem:[%s1873_s3 + $0x18] sm:$0xff]  ;;  %v880_v13 = vld [vmem:[%s1873_s3 + $0x20] sm:$0xff]  ;;  %v881_v14 = vld [vmem:[%s1873_s3 + $0x28] sm:$0xff] }
  0x1c   : > { %1229 = vmatprep.subr.bf16.mxu0 %v1496_v24  ;;  %v1401_v12 = vpack.c.bf16 %v879_v11, %v878_v9  ;;  %v1405_v15 = vpack.c.bf16 %v881_v14, %v880_v13  ;;  %v882_v16 = vld [vmem:[%s1873_s3 + $0x30] sm:$0xff]  ;;  %v883_v17 = vld [vmem:[%s1873_s3 + $0x38] sm:$0xff]  ;;  %v884_v19 = vld [vmem:[%s1873_s3 + $0x40] sm:$0xff] }
  0x1d   : > { %1250 = vmatpush3.bf16.msra.mxu1 %v1495_v23  ;;  %v1409_v18 = vpack.c.bf16 %v883_v17, %v882_v16  ;;  %v885_v20 = vld [vmem:[%s1873_s3 + $0x48] sm:$0xff]  ;;  %v886_v22 = vld [vmem:[%s1873_s3 + $0x50] sm:$0xff]  ;;  %v887_v23 = vld [vmem:[%s1873_s3 + $0x58] sm:$0xff] }
  0x1e   : > { %1251 = vmatprep.subr.bf16.mxu1 %v1498_v26  ;;  %v1413_v21 = vpack.c.bf16 %v885_v20, %v884_v19  ;;  %v1417_v24 = vpack.c.bf16 %v887_v23, %v886_v22  ;;  %v889_v26 = vld [vmem:[%s1873_s3 + $0x68] sm:$0xff]  ;;  %v976_v31 = vld [vmem:[%s1875_s5] sm:$0xff]  ;;  %v978_v33 = vld [vmem:[%s1875_s5 + $0x10] sm:$0xff] }
  0x1f   : > { %1230 = vmatpush3.bf16.msra.mxu0 %v1497_v25  ;;  %v888_v25 = vld [vmem:[%s1873_s3 + $0x60] sm:$0xff]  ;;  %v977_v32 = vld [vmem:[%s1875_s5 + $0x8] sm:$0xff]  ;;  %v979_v35 = vld [vmem:[%s1875_s5 + $0x18] sm:$0xff] }
  0x20   : > { %1231 = vmatprep.subr.bf16.mxu0 %v1500_v28  ;;  %v890_v28 = vld [vmem:[%s1873_s3 + $0x70] sm:$0xff]  ;;  %v1433_v36 = vpack.c.bf16 %v979_v35, %v978_v33  ;;  %v983_v41 = vld [vmem:[%s1875_s5 + $0x38] sm:$0xff]  ;;  %v985_v44 = vld [vmem:[%s1875_s5 + $0x48] sm:$0xff] }
  0x21   : > { %1252 = vmatpush3.bf16.msra.mxu1 %v1499_v27  ;;  %v1421_v27 = vpack.c.bf16 %v889_v26, %v888_v25  ;;  %v982_v40 = vld [vmem:[%s1875_s5 + $0x30] sm:$0xff]  ;;  %v991_v22 = vld [vmem:[%s1875_s5 + $0x78] sm:$0xff] }
  0x22   : > { %1253 = vmatprep.subr.bf16.mxu1 %v1502_v30 }
  0x23   : > { %1232 = vmatpush3.bf16.msra.mxu0 %v1501_v29  ;;  %v891_v29 = vld [vmem:[%s1873_s3 + $0x78] sm:$0xff] }
  0x24   : > { %1261 = vmatprep.subr.bf16.mxu0 %v1504_v38  ;;  %v1425_v30 = vpack.c.bf16 %v891_v29, %v890_v28  ;;  %v981_v38 = vld [vmem:[%s1875_s5 + $0x28] sm:$0xff] }
  0x25   : > { %1254 = vmatpush3.bf16.msra.mxu1 %v1503_v34  ;;  %v1429_v34 = vpack.c.bf16 %v977_v32, %v976_v31  ;;  %v1214_v31 = vld [vmem:[%s1876_s6] ss:$0 sm:$0xff] }
  0x26   : > { %1321 = vmatprep.subr.bf16.mxu1 %v1537_v43  ;;  %743 = vmatmul.mubr.bf16.vlgmr.msra.gmra.mrb[0].mxu0 %v300_v37  ;;  %v980_v37 = vld [vmem:[%s1875_s5 + $0x20] sm:$0xff] }
  0x27   : > { %1262 = vmatpush3.bf16.msra.mxu0 %v1505_v42  ;;  %824 = vmatprep.mubr.bf16.mxu0 %v305_v60  ;;  %v1437_v39 = vpack.c.bf16 %v981_v38, %v980_v37  ;;  %v1441_v42 = vpack.c.bf16 %v983_v41, %v982_v40 }
  0x28   : > { %784 = vmatmul.mubr.bf16.vlgmr.msra.gmra.mrb[0].mxu1 %v302_v46  ;;  %1263 = vmatprep.subr.bf16.mxu0 %v1506_v47  ;;  %v986_v46 = vld [vmem:[%s1875_s5 + $0x50] sm:$0xff]  ;;  %v987_v47 = vld [vmem:[%s1875_s5 + $0x58] sm:$0xff] }
  0x29   : > { %1323 = vmatprep.mubr.msk.bf16.mxu1 %vm1538_vm0, %v1537_v43  ;;  %1322 = vmatpush3.bf16.msra.mxu1 %v1520_v56  ;;  %v984_v43 = vld [vmem:[%s1875_s5 + $0x40] sm:$0xff] }
  0x2a   : > { %1398 = vmatprep.subr.bf16.mxu1 %v1397_v10  ;;  %v1445_v45 = vpack.c.bf16 %v985_v44, %v984_v43 }
  0x2b   : > { %1264 = vmatpush3.bf16.msra.mxu0 %v1507_v48  ;;  %v1449_v48 = vpack.c.bf16 %v987_v47, %v986_v46 }
  0x2c   : > { %1265 = vmatprep.subr.bf16.mxu0 %v1508_v49  ;;  %v988_v49 = vld [vmem:[%s1875_s5 + $0x60] sm:$0xff] }
  0x2f   : > { %1266 = vmatpush3.bf16.msra.mxu0 %v1509_v50  ;;  %v989_v50 = vld [vmem:[%s1875_s5 + $0x68] sm:$0xff] }
  0x30   : > { %1267 = vmatprep.subr.bf16.mxu0 %v1510_v51  ;;  %1324 = vmatmul.mubr.msk.bf16.vlgmr.msra.gmra.mrb[4].mxu1 %vm706_vm1, %v306_v0  ;;  %v1453_v51 = vpack.c.bf16 %v989_v50, %v988_v49 }
  0x31   : > { %1400 = vmatpush3.bf16.msra.mxu1 %v1397_v10 }
  0x32   : > { %1402 = vmatprep.subr.bf16.mxu1 %v1401_v12 }
  0x33   : > { %1268 = vmatpush3.bf16.msra.mxu0 %v1511_v52 }
  0x34   : > { %1269 = vmatprep.subr.bf16.mxu0 %v1512_v53  ;;  %v1162_v53 = vld [vmem:[%s1872_s2] ss:$0 sm:$0xff] }
  0x35   : > { %1404 = vmatpush3.bf16.msra.mxu1 %v1401_v12 }
  0x36   : > { %1406 = vmatprep.subr.bf16.mxu1 %v1405_v15 }
  0x37   : > { %1270 = vmatpush3.bf16.msra.mxu0 %v1513_v54 }
  0x38   : > { %1271 = vmatprep.subr.bf16.mxu0 %v1514_v55 }
  0x39   : > { %1408 = vmatpush3.bf16.msra.mxu1 %v1405_v15 }
  0x3a   : > { %1410 = vmatprep.subr.bf16.mxu1 %v1409_v18 }
  0x3b   : > { %1272 = vmatpush3.bf16.msra.mxu0 %v1515_v59 }
  0x3c   : > { %1273 = vmatprep.subr.bf16.mxu0 %v1516_v63 }
  0x3d   : > { %1412 = vmatpush3.bf16.msra.mxu1 %v1409_v18 }
  0x3e   : > { %1414 = vmatprep.subr.bf16.mxu1 %v1413_v21 }
  0x3f   : > { %1274 = vmatpush3.bf16.msra.mxu0 %v1517_v1 }
  0x40   : > { %1275 = vmatprep.subr.bf16.mxu0 %v1518_v2 }
  0x41   : > { %1416 = vmatpush3.bf16.msra.mxu1 %v1413_v21  ;;  %v990_v21 = vld [vmem:[%s1875_s5 + $0x70] sm:$0xff] }
  0x42   : > { %1418 = vmatprep.subr.bf16.mxu1 %v1417_v24  ;;  %v1457_v23 = vpack.c.bf16 %v991_v22, %v990_v21 }
  0x43   : > { %1276 = vmatpush3.bf16.msra.mxu0 %v1519_v3 }
  0x44   : > { %1430 = vmatprep.subr.bf16.mxu0 %v1429_v34 }
  0x45   : > { %1420 = vmatpush3.bf16.msra.mxu1 %v1417_v24  ;;  %v1213_v24 = vld [vmem:[%s1874_s4] ss:$0 sm:$0xff] }
  0x46   : > { %825 = vmatmul.mubr.bf16.vlgmr.msra.gmra.mrb[4].mxu0 %v304_v6  ;;  %1422 = vmatprep.subr.bf16.mxu1 %v1421_v27 }
  0x47   : > { %1432 = vmatpush3.bf16.msra.mxu0 %v1429_v34 }
  0x48   : > { %1434 = vmatprep.subr.bf16.mxu0 %v1433_v36 }
  0x49   : > { %1424 = vmatpush3.bf16.msra.mxu1 %v1421_v27 }
  0x4a   : > { %1426 = vmatprep.subr.bf16.mxu1 %v1425_v30 }
  0x4b   : > { %1436 = vmatpush3.bf16.msra.mxu0 %v1433_v36 }
  0x4c   : > { %1438 = vmatprep.subr.bf16.mxu0 %v1437_v39 }
  0x4d   : > { %1428 = vmatpush3.bf16.msra.mxu1 %v1425_v30 }
  0x4f   : > { %1440 = vmatpush3.bf16.msra.mxu0 %v1437_v39 }
  0x50   : > { %1442 = vmatprep.subr.bf16.mxu0 %v1441_v42 }
  0x53   : > { %1444 = vmatpush3.bf16.msra.mxu0 %v1441_v42 }
  0x54   : > { %1446 = vmatprep.subr.bf16.mxu0 %v1445_v45 }
  0x57   : > { %1448 = vmatpush3.bf16.msra.mxu0 %v1445_v45 }
  0x58   : > { %1450 = vmatprep.subr.bf16.mxu0 %v1449_v48 }
  0x5b   : > { %1452 = vmatpush3.bf16.msra.mxu0 %v1449_v48 }
  0x5c   : > { %1454 = vmatprep.subr.bf16.mxu0 %v1453_v51 }
  0x5f   : > { %1456 = vmatpush3.bf16.msra.mxu0 %v1453_v51 }
  0x60   : > { %1458 = vmatprep.subr.bf16.mxu0 %v1457_v23 }
  0x63   : > { %1460 = vmatpush3.bf16.msra.mxu0 %v1457_v23 }
  0xf9   : > { %v1233_v52 = vpop.f32.mrb[0].mxu0 }
  0xfa   : > { %v1234_v54 = vpop.f32.mrb[1].mxu0 }
  0xfb   : > { %v1235_v55 = vadd.f32 %v1234_v54, %v1233_v52  ;;  %v1236_v56 = vpop.f32.mrb[2].mxu0  ;;  %v1255_v57 = vpop.f32.mrb[0].mxu1 }
  0xfc   : > { %v1237_v58 = vpop.f32.mrb[3].mxu0  ;;  %v1256_v61 = vpop.f32.mrb[1].mxu1 }
  0xfd   : > { %v745_v59 = vadd.f32 %v1235_v55, %v1162_v53  ;;  %v1238_v60 = vadd.f32 %v1237_v58, %v1236_v56  ;;  %v1257_v62 = vadd.f32 %v1256_v61, %v1255_v57  ;;  %v1258_v63 = vpop.f32.mrb[2].mxu1 }
  0xfe   : > { %v1259_v1 = vpop.f32.mrb[3].mxu1 }
  0xff   : > { %v748_v0 = vadd.f32 %v1238_v60, %v1162_v53  ;;  %v786_v2 = vadd.f32 %v1257_v62, %v745_v59  ;;  %v1260_v3 = vadd.f32 %v1259_v1, %v1258_v63 }
 0x101   : > { %v789_v4 = vadd.f32 %v1260_v3, %v748_v0 }
 0x103   : > { %v867_v5 = vpop.f32.mrb[4].mxu1 }
 0x104   : > { %v1325_v6 = vpop.f32.mrb[5].mxu1 }
 0x105   : > { %v870_v7 = vpop.f32.mrb[6].mxu1 }
 0x106   : > { %v1326_v8 = vpop.f32.mrb[7].mxu1 }
 0x119   : > { %v1277_v9 = vpop.f32.mrb[4].mxu0 }
 0x11a   : > { %v1278_v10 = vpop.f32.mrb[5].mxu0 }
 0x11b   : > { %v1279_v11 = vadd.f32 %v1278_v10, %v1277_v9  ;;  %v1280_v12 = vpop.f32.mrb[6].mxu0 }
 0x11c   : > { %v1281_v13 = vpop.f32.mrb[7].mxu0 }
 0x11d   : > { %v827_v14 = vadd.f32 %v1279_v11, %v786_v2  ;;  %v1282_v15 = vadd.f32 %v1281_v13, %v1280_v12 }
 0x11f   : > { %v868_v16 = vadd.f32 %v867_v5, %v827_v14  ;;  %v830_v17 = vadd.f32 %v1282_v15, %v789_v4 }
 0x121   : > { %v874_v18 = vmax.f32 %v868_v16, 0.0  ;;  %v871_v19 = vadd.f32 %v870_v7, %v830_v17 }
 0x123   : > { %v875_v20 = vmax.f32 %v871_v19, 0.0  ;;  %1359 = vmatprep.mubr.f32.mxu1 %v874_v18 }
 0x125   : > { %1360 = vmatmul.mubr.f32.vlgmr.msra.gmra.mrb[8].mxu1 %v875_v20 }
 0x1f8   : > { %v1361_v25 = vpop.f32.mrb[8].mxu1 }
 0x1f9   : > { %v971_v26 = vadd.f32 %v1361_v25, %v1213_v24  ;;  %v965_v27 = vpop.f32.mrb[9].mxu1 }
 0x1fa   : > { %v966_v28 = vadd.f32 %v1213_v24, %v965_v27 }
 0x1fb   : > { %v975_v30 = vmax.f32 %v971_v26, 0.0 }
 0x1fc   : > { %v974_v29 = vmax.f32 %v966_v28, 0.0 }
 0x1fe   : > { %1394 = vmatprep.mubr.f32.mxu0 %v974_v29 }
 0x1ff   : > { %1395 = vmatmul.mubr.f32.vlgmr.msra.gmra.mrb[8].mxu0 %v975_v30 }
 0x2d2   : > { %v1396_v32 = vpop.f32.mrb[8].mxu0 }
 0x2d3   : > { %v1065_v33 = vpop.f32.mrb[9].mxu0  ;;  %v1071_v35 = vadd.f32 %v1396_v32, %v1214_v31 }
 0x2d4   : > { %v1066_v34 = vadd.f32 %v1214_v31, %v1065_v33 }
 0x2d6   : > { %1074 = vmax.xlane.f32.xlu0 %v1066_v34 }
 0x2da   : > { %1076 = vmax.xlane.f32.xlu0 %v1071_v35 }
 0x363   : > { %v1075_v36 = vpop.xlane.xlu0 %1074 }
 0x364   : > { %v1078_v37 = vsub.f32 %v1066_v34, %v1075_v36 }
 0x366   : > { %v1080_v38 = vmul.f32 1.442695, %v1078_v37 }
 0x367   : > { %v1077_v39 = vpop.xlane.xlu0 %1076 }
 0x368   : > { %v1079_v40 = vsub.f32 %v1071_v35, %v1077_v39  ;;  %1521 = vpow2.f32 %v1080_v38 }
 0x36a   : > { %v1082_v41 = vmul.f32 1.442695, %v1079_v40 }
 0x36c   : > { %1523 = vpow2.f32 %v1082_v41 }
 0x372   : > { %v1522_v42 = vpop.eup %1521 }
 0x373   : > { %1084 = vadd.xlane.f32.xlu1 %v1522_v42 }
 0x376   : > { %v1524_v43 = vpop.eup %1523 }
 0x377   : > { %1086 = vadd.xlane.f32.xlu1 %v1524_v43 }
 0x400   : > { %v1085_v44 = vpop.xlane.xlu1 %1084 }
 0x401   : > { %1525 = vlog2.f32 %v1085_v44 }
 0x404   : > { %v1087_v45 = vpop.xlane.xlu1 %1086 }
 0x405   : > { %1527 = vlog2.f32 %v1087_v45 }
 0x40b   : > { %v1526_v46 = vpop.eup %1525 }
 0x40c   : > { %v1089_v47 = vmul.f32 0.6931472, %v1526_v46 }
 0x40e   : > { %v1092_v48 = vsub.f32 %v1078_v37, %v1089_v47 }
 0x40f   : > { %v1528_v49 = vpop.eup %1527 }
 0x410   : > { %1095 = vst.msk [vmem:[%s283_s12] sm:$0xff] %vm1094_vm2, %v1092_v48  ;;  %v1091_v50 = vmul.f32 0.6931472, %v1528_v49 }
 0x412   : > { %v1093_v51 = vsub.f32 %v1079_v40, %v1091_v50 }
 0x414   : > { %1096 = vst.msk [vmem:[%s283_s12 + $0x8] sm:$0xff] %vm1094_vm2, %v1093_v51 }
 0x415 PF: > { %s17_s24 = sadd.s32 1, %s1535_s24  }
 0x416   : > { %p14_p4 = scmp.ge.s32.totalorder %s17_s24, 5  }
 0x418   :  { %16 = sbr.rel (!%p14_p4) target bundleno = 1 (0x1), region = 78 }

</bundles_post_ra>
